<compile_context>
chip_gen: v6e
topology: v6e:2x2x1
jax: 0.10.0
libtpu: 0.0.40
codegen_flags: <defaults>
</compile_context>

<pallas_src>
import functools

import jax
import jax.numpy as jnp
from jax import lax
from jax.experimental import pallas as pl
from jax.experimental.pallas import tpu as pltpu


def _round_up(x: int, m: int) -> int:
    return ((x + m - 1) // m) * m


def _device_info():
    """(is_v7, physical_vmem_bytes) with conservative fallbacks."""
    kind = ""
    try:
        kind = jax.devices()[0].device_kind.lower()
    except Exception:
        pass
    is_v7 = "v7" in kind
    vmem_bytes = 64 * 1024 * 1024  # conservative default (v7x-sized)
    try:
        vmem_bytes = int(pltpu.get_tpu_info().vmem_capacity_bytes)
    except Exception:
        if (not is_v7) and any(v in kind for v in ("v4", "v5", "v6")):
            vmem_bytes = 128 * 1024 * 1024
    return is_v7, vmem_bytes


def _make_ce_ls_kernel(epsilon: float, num_classes: int, batch: int,
                       total_rows: int, tb: int, steps_per_shard: int):
    """Kernel body with smoothing constants and padding layout baked in."""
    off_w = float(epsilon) / float(num_classes)          # smoothed off-target weight
    on_w = 1.0 - float(epsilon) + off_w                  # smoothed target weight
    has_padding = total_rows != batch
    first_pad_block = batch // tb                        # first block that may hold pad rows

    def kernel(t_ref, x_ref, o_ref, acc_ref):
        c = pl.program_id(0)
        i = pl.program_id(1)

        # Zero the per-shard scalar accumulator on the first step (P3).
        @pl.when(i == 0)
        def _():
            acc_ref[...] = jnp.zeros_like(acc_ref)

        x = x_ref[...].astype(jnp.float32)               # (tb, C) f32 working copy
        labels = t_ref[...]                              # (tb, 1) int32
        tbl, C = x.shape

        # Stable log-softmax pieces (classes on the lane axis).
        m = jnp.max(x, axis=-1, keepdims=True)           # (tb, 1)
        e = jnp.exp(x - m)                               # (tb, C)
        lse = jnp.log(jnp.sum(e, axis=-1, keepdims=True))  # (tb, 1)

        # Fused smoothed-weight row sum: one select, one multiply, one lane reduce.
        col = lax.broadcasted_iota(jnp.int32, (tbl, C), 1)
        w = jnp.where(col == labels, jnp.float32(on_w), jnp.float32(off_w))
        wx = jnp.sum(w * x, axis=-1, keepdims=True)      # (tb, 1)

        row_loss = (m + lse) - wx                        # (tb, 1), sum_j w_j == 1

        if has_padding:
            global_block = c * steps_per_shard + i
            # Steady-state blocks (all rows real) skip the iota/compare/select mask.
            @pl.when(global_block < first_pad_block)
            def _():
                acc_ref[...] += jnp.sum(row_loss, keepdims=True)

            @pl.when(global_block >= first_pad_block)
            def _():
                row = lax.broadcasted_iota(jnp.int32, (tbl, 1), 0)
                valid = (global_block * tb + row) < batch
                acc_ref[...] += jnp.sum(jnp.where(valid, row_loss, 0.0),
                                        keepdims=True)
        else:
            acc_ref[...] += jnp.sum(row_loss, keepdims=True)

        # Epilogue: emit this shard's unnormalized partial sum.
        @pl.when(i == pl.num_programs(1) - 1)
        def _():
            o_ref[...] = acc_ref[...]

    return kernel


@functools.partial(jax.jit, static_argnames=("epsilon", "tb_override"))
def cross_entropy_label_smooth(inputs, targets, *, epsilon: float, tb_override=None):
    """inputs: (N, C) logits (any float dtype); targets: (N,) int labels -> scalar loss."""
    N, C = inputs.shape
    in_bytes = jnp.dtype(inputs.dtype).itemsize
    # Native sublane tile for the input dtype: 8 (f32), 16 (bf16/f16), 32 (int8/fp8).
    sub = max(8, 32 // max(1, in_bytes))

    is_v7, vmem_cap = _device_info()

    # ---- Generation-aware VMEM budget --------------------------------------
    # Scoped limit: 3/4 of physical VMEM (96 MiB on v5e/v6e, 48 MiB on v7x);
    # per-step working budget: 1/3 of that, counting everything that actually
    # lives in VMEM (see bytes_per_row below).
    vmem_limit = min(vmem_cap * 3 // 4, 96 * 1024 * 1024)
    tile_budget = vmem_limit // 3

    n_in_bufs = 3 if is_v7 else 2                 # Buffered(3) on v7x, else double-buffer
    c_vmem = _round_up(C, 128)                    # lane-padded footprint of a (tb, C) tile
    # native-dtype input buffers + ~3 f32 (tb,C) temporaries
    # + lane-padded (tb,1) targets blocks (x2 buffers) + scratch slack.
    bytes_per_row = c_vmem * (n_in_bufs * in_bytes + 3 * 4) + 2 * 512 + 64

    if tb_override is not None:
        tb = _round_up(int(tb_override), sub)
    else:
        tb = max(sub, (tile_budget // bytes_per_row) // sub * sub)

    # ---- Shard selection (v7x: always keep both TensorCores busy) ----------
    if is_v7:
        num_shards = 2
    else:
        num_shards = 2 if N >= 2 * tb else 1
    per_shard_rows = _round_up(-(-N // num_shards), sub)
    tb = max(sub, (min(tb, per_shard_rows) // sub) * sub)

    Np = _round_up(N, tb * num_shards)
    steps_per_shard = Np // (tb * num_shards)

    # ---- Pad ragged batch; logits stay in NATIVE dtype (cast in-kernel) ----
    t2 = targets.astype(jnp.int32)
    x = inputs
    if Np != N:
        x = jnp.pad(x, ((0, Np - N), (0, 0)))     # zero rows -> masked in-kernel
        t2 = jnp.pad(t2, (0, Np - N))
    t2 = t2.reshape(Np, 1)

    kernel = _make_ce_ls_kernel(float(epsilon), C, N, Np, tb, steps_per_shard)

    block_idx = lambda c, i: (c * steps_per_shard + i, 0)
    if is_v7 and steps_per_shard >= 3:
        logits_spec = pl.BlockSpec((tb, C), block_idx, pipeline_mode=pl.Buffered(3))
    else:
        logits_spec = pl.BlockSpec((tb, C), block_idx)

    if is_v7:
        dims = (pltpu.CORE_PARALLEL, pltpu.ARBITRARY)   # guarantee the 2-TC split
    else:
        dims = ("parallel", "arbitrary")

    out = pl.pallas_call(
        kernel,
        out_shape=jax.ShapeDtypeStruct((num_shards, 1), jnp.float32),
        grid_spec=pltpu.PrefetchScalarGridSpec(
            num_scalar_prefetch=0,
            grid=(num_shards, steps_per_shard),
            in_specs=[
                pl.BlockSpec((tb, 1), block_idx),
                logits_spec,
            ],
            out_specs=pl.BlockSpec((1, 1), lambda c, i: (c, 0)),
            scratch_shapes=[pltpu.VMEM((1, 1), jnp.float32)],
        ),
        compiler_params=pltpu.CompilerParams(
            dimension_semantics=dims,
            vmem_limit_bytes=int(vmem_limit),
        ),
    )(t2, x)
    return jnp.sum(out) * (1.0 / float(N))


def _reference(inputs, targets, epsilon):
    """Pure-JAX reference mirroring the PyTorch module."""
    N, C = inputs.shape
    log_probs = jax.nn.log_softmax(inputs.astype(jnp.float32), axis=1)
    onehot = jax.nn.one_hot(targets, C, dtype=jnp.float32)
    smooth = (1.0 - epsilon) * onehot + epsilon / C
    return (-smooth * log_probs).mean(0).sum()


if __name__ == "__main__":
    num_classes = 128
    epsilon = 0.1
    key = jax.random.PRNGKey(0)

    # Test 1: small f32 batch (single grid step per shard).
    k1, k2 = jax.random.split(key)
    N = 16
    inputs = jax.random.normal(k1, (N, num_classes), dtype=jnp.float32)
    targets = jax.random.randint(k2, (N,), 0, num_classes, dtype=jnp.int32)
    loss = jax.block_until_ready(cross_entropy_label_smooth(inputs, targets, epsilon=epsilon))
    ref = _reference(inputs, targets, epsilon)
    assert jnp.allclose(loss, ref, rtol=1e-4, atol=1e-5), (loss, ref)

    # Test 2: forced small tile -> multi-step accumulation, 2 shards, and
    # row padding/masking (N not a tile multiple).
    k3, k4 = jax.random.split(k2)
    N2 = 40
    inputs2 = jax.random.normal(k3, (N2, num_classes), dtype=jnp.float32)
    targets2 = jax.random.randint(k4, (N2,), 0, num_classes, dtype=jnp.int32)
    loss2 = jax.block_until_ready(
        cross_entropy_label_smooth(inputs2, targets2, epsilon=epsilon, tb_override=8))
    ref2 = _reference(inputs2, targets2, epsilon)
    assert jnp.allclose(loss2, ref2, rtol=1e-4, atol=1e-5), (loss2, ref2)

    # Test 3: native bf16 logits (cast happens in-kernel; tb rounded to 16-row tiles).
    k5, k6 = jax.random.split(k4)
    N3 = 24
    inputs3 = jax.random.normal(k5, (N3, num_classes), dtype=jnp.bfloat16)
    targets3 = jax.random.randint(k6, (N3,), 0, num_classes, dtype=jnp.int32)
    loss3 = jax.block_until_ready(
        cross_entropy_label_smooth(inputs3, targets3, epsilon=epsilon))
    ref3 = _reference(inputs3, targets3, epsilon)
    assert jnp.allclose(loss3, ref3, rtol=1e-4, atol=1e-4), (loss3, ref3)

    print("KERNEL_OK")
</pallas_src>

<mosaic_0001>
module attributes {stable_mosaic.version = 11 : i64} {
  func.func @kernel(%arg0: i32, %arg1: i32, %arg2: memref<16x1xi32, #tpu.memory_space<vmem>>, %arg3: memref<16x128xf32, #tpu.memory_space<vmem>>, %arg4: memref<1x1xf32, #tpu.memory_space<vmem>>, %arg5: memref<1x1xf32, #tpu.memory_space<vmem>>) attributes {dimension_semantics = [#tpu.dimension_semantics<parallel>, #tpu.dimension_semantics<arbitrary>], iteration_bounds = array<i64: 1, 1>, scalar_prefetch = 0 : i64, scratch_operands = 1 : i64, tpu.core_type = #tpu.core_type<tc>, window_params = [{transform_indices = @transform_0, window_bounds = array<i64: 16, 1>}, {transform_indices = @transform_1, window_bounds = array<i64: 16, 128>}, {transform_indices = @transform_2, window_bounds = array<i64: 1, 1>}]} {
    %c0_i32 = arith.constant 0 : i32
    %0 = arith.cmpi eq, %arg1, %c0_i32 : i32
    %1 = arith.extui %0 : i1 to i32
    %c0_i32_0 = arith.constant 0 : i32
    %2 = arith.cmpi ne, %1, %c0_i32_0 : i32
    scf.if %2 {
      %cst_15 = arith.constant 0.000000e+00 : f32
      %35 = vector.broadcast %cst_15 : f32 to vector<1x1xf32>
      %c0_16 = arith.constant 0 : index
      %c0_17 = arith.constant 0 : index
      %36 = vector.load %arg5[%c0_16, %c0_17] : memref<1x1xf32, #tpu.memory_space<vmem>>, vector<1x1xf32>
      tpu.vector_store %arg5[%c0_16, %c0_17], %35 {strides = array<i32>} : memref<1x1xf32, #tpu.memory_space<vmem>>, vector<1x1xf32>,
    } else {
    }
    %c0 = arith.constant 0 : index
    %c0_1 = arith.constant 0 : index
    %3 = vector.load %arg3[%c0, %c0_1] : memref<16x128xf32, #tpu.memory_space<vmem>>, vector<16x128xf32>
    %c0_2 = arith.constant 0 : index
    %c0_3 = arith.constant 0 : index
    %4 = vector.load %arg2[%c0_2, %c0_3] : memref<16x1xi32, #tpu.memory_space<vmem>>, vector<16x1xi32>
    %cst = arith.constant dense<0xFF800000> : vector<16xf32>
    %5 = vector.multi_reduction <maximumf>, %3, %cst [1] : vector<16x128xf32> to vector<16xf32>
    %6 = vector.shape_cast %5 : vector<16xf32> to vector<16x1xf32>
    %7 = vector.broadcast %6 : vector<16x1xf32> to vector<16x128xf32>
    %8 = arith.subf %3, %7 : vector<16x128xf32>
    %9 = math.exp %8 : vector<16x128xf32>
    %cst_4 = arith.constant dense<0.000000e+00> : vector<16xf32>
    %10 = vector.multi_reduction <add>, %9, %cst_4 [1] : vector<16x128xf32> to vector<16xf32>
    %11 = vector.shape_cast %10 : vector<16xf32> to vector<16x1xf32>
    %12 = math.log %11 : vector<16x1xf32>
    %13 = tpu.iota {dimensions = array<i32: 1>} : vector<16x128xi32>
    %14 = vector.broadcast %4 : vector<16x1xi32> to vector<16x128xi32>
    %15 = arith.cmpi eq, %13, %14 : vector<16x128xi32>
    %cst_5 = arith.constant 0.900781273 : f32
    %cst_6 = arith.constant 7.812500e-04 : f32
    %16 = vector.broadcast %cst_5 : f32 to vector<16x128xf32>
    %17 = vector.broadcast %cst_6 : f32 to vector<16x128xf32>
    %18 = arith.select %15, %16, %17 : vector<16x128xi1>, vector<16x128xf32>
    %19 = arith.mulf %18, %3 : vector<16x128xf32>
    %cst_7 = arith.constant dense<0.000000e+00> : vector<16xf32>
    %20 = vector.multi_reduction <add>, %19, %cst_7 [1] : vector<16x128xf32> to vector<16xf32>
    %21 = vector.shape_cast %20 : vector<16xf32> to vector<16x1xf32>
    %22 = arith.addf %6, %12 : vector<16x1xf32>
    %23 = arith.subf %22, %21 : vector<16x1xf32>
    %c0_8 = arith.constant 0 : index
    %c0_9 = arith.constant 0 : index
    %24 = vector.load %arg5[%c0_8, %c0_9] : memref<1x1xf32, #tpu.memory_space<vmem>>, vector<1x1xf32>
    %25 = vector.shape_cast %23 : vector<16x1xf32> to vector<1x16x1xf32>
    %cst_10 = arith.constant dense<0.000000e+00> : vector<1xf32>
    %26 = vector.multi_reduction <add>, %25, %cst_10 [1, 2] : vector<1x16x1xf32> to vector<1xf32>
    %27 = vector.shape_cast %26 : vector<1xf32> to vector<1x1x1xf32>
    %28 = vector.extract %27[0, 0, 0] : f32 from vector<1x1x1xf32>
    %29 = vector.broadcast %28 : f32 to vector<1x1xf32>
    %30 = arith.addf %24, %29 : vector<1x1xf32>
    %c0_11 = arith.constant 0 : index
    %c0_12 = arith.constant 0 : index
    %31 = vector.load %arg5[%c0_11, %c0_12] : memref<1x1xf32, #tpu.memory_space<vmem>>, vector<1x1xf32>
    tpu.vector_store %arg5[%c0_11, %c0_12], %30 {strides = array<i32>} : memref<1x1xf32, #tpu.memory_space<vmem>>, vector<1x1xf32>,
    %c0_i32_13 = arith.constant 0 : i32
    %32 = arith.cmpi eq, %arg1, %c0_i32_13 : i32
    %33 = arith.extui %32 : i1 to i32
    %c0_i32_14 = arith.constant 0 : i32
    %34 = arith.cmpi ne, %33, %c0_i32_14 : i32
    scf.if %34 {
      %c0_15 = arith.constant 0 : index
      %c0_16 = arith.constant 0 : index
      %35 = vector.load %arg5[%c0_15, %c0_16] : memref<1x1xf32, #tpu.memory_space<vmem>>, vector<1x1xf32>
      %c0_17 = arith.constant 0 : index
      %c0_18 = arith.constant 0 : index
      %36 = vector.load %arg4[%c0_17, %c0_18] : memref<1x1xf32, #tpu.memory_space<vmem>>, vector<1x1xf32>
      tpu.vector_store %arg4[%c0_17, %c0_18], %35 {strides = array<i32>} : memref<1x1xf32, #tpu.memory_space<vmem>>, vector<1x1xf32>,
    } else {
    }
    return
  }
  func.func @transform_0(%arg0: i32, %arg1: i32) -> (i32, i32) {
    %c1_i32 = arith.constant 1 : i32
    %0 = arith.muli %arg0, %c1_i32 : i32
    %1 = arith.addi %0, %arg1 : i32
    %c0_i32 = arith.constant 0 : i32
    %c0_i32_0 = arith.constant 0 : i32
    return %1, %c0_i32 : i32, i32
  }
  func.func @transform_1(%arg0: i32, %arg1: i32) -> (i32, i32) {
    %c1_i32 = arith.constant 1 : i32
    %0 = arith.muli %arg0, %c1_i32 : i32
    %1 = arith.addi %0, %arg1 : i32
    %c0_i32 = arith.constant 0 : i32
    %c0_i32_0 = arith.constant 0 : i32
    return %1, %c0_i32 : i32, i32
  }
  func.func @transform_2(%arg0: i32, %arg1: i32) -> (i32, i32) {
    %c0_i32 = arith.constant 0 : i32
    %c0_i32_0 = arith.constant 0 : i32
    return %arg0, %c0_i32 : i32, i32
  }
}

</mosaic_0001>

<bundles_post_ra>
// kernel: cross_entropy_label_smooth.1
= control target key start
LH: loop header
LB: loop body
LE: loop exit
PB: predicated region body
PF: predicated region fallthrough
CT: control target
= control target key end

     0   :  { %v193_v2 = vmov 0   ;;  %s230_s0 = inlined_call_operand.vmem [shape: s32[16,1], index: 0, kind: input, shape index: {}]   ;;  %s231_s1 = inlined_call_operand.vmem [shape: f32[16,128], index: 1, kind: input, shape index: {}]   ;;  %s232_s2 = inlined_call_operand.hbm [shape: f32[1,1], index: 2, kind: output, shape index: {}]  }
   0x1   :  { %v62_v0 = vld [vmem:[%s231_s1] sm:$0xff]  ;;  %161 = vset.pattern.permute.xlu1 %v193_v2 }
   0x2   :  { %v64_v1 = vld [vmem:[%s230_s0] sm:$0xff]  ;;  %66 = vmax.xlane.f32.xlu0 %v62_v0 }
   0x3   :  { %7 = vsyncpa [#allocation4], 0  ;;  %v63_v3 = vld [vmem:[%s231_s1 + $0x8] sm:$0xff]  ;;  %87 = vperm.xlu1 %161, %v64_v1   ;;  %162 = vset.pattern.permute.xlu0 %v193_v2  ;;  %v84_v10 = vlaneseq  ;;  %v194_v15 = vmov 0.00078125   ;;  %vm107_vm2 = vcmask 7168  }
   0x4   :  { %v65_v4 = vld [vmem:[%s230_s0 + $0x8] sm:$0xff]  ;;  %vm60_vm3 = vcmask 0   ;;  %v195_v37 = vmov 0.0   ;;  %s196_s1 = smov [#allocation3]  }
   0x5   :  { %v85_v13 = vand.u32 127, %v84_v10  ;;  %61 = vst.msk [vmem:[#allocation2] sm:$0x1] %vm60_vm3, %v195_v37  ;;  %s135_s17 = sshll.u32 %s196_s1, 4  ;;  %s136_s17 = int_to_ptr.vmem [resolvable:$true] %s135_s17 }
   0x6   :  { %68 = vmax.xlane.f32.xlu0 %v63_v3  ;;  %s171_s18 = scalar_lea.vmem %s136_s17, 16  ;;  %s175_s19 = scalar_lea.vmem %s136_s17, 32 }
   0x7   :  { %90 = vperm.xlu1 %161, %v65_v4   ;;  %p172_p0 = scmp.ne.s32.totalorder %s136_s17, %s171_s18  ;;  %p176_p1 = scmp.lt.s32.totalorder %s136_s17, %s136_s17 }
   0x8   :  { %p177_p2 = scmp.lt.s32.totalorder %s175_s19, %s171_s18 }
   0xa   :  { %p178_p3 = por %p177_p2, %p176_p1 }
   0xc   :  { %v106_v45 = vld [vmem:[#allocation2] sm:$0x1]  ;;  %p179_p4 = pnand %p178_p3, %p172_p0 }
  0x7e   :  { %v88_v12 = vpop.permute.xlu1 %87 }
  0x7f   :  { %vm92_vm0 = vcmp.eq.s32.totalorder %v85_v13, %v88_v12 }
  0x80   :  { %v94_v16 = vsel %vm92_vm0, 0.9007813, %v194_v15 }
  0x81   :  { %v96_v18 = vmul.f32 %v94_v16, %v62_v0 }
  0x82   :  { %v91_v14 = vpop.permute.xlu1 %90 }
  0x83   :  { %vm93_vm1 = vcmp.eq.s32.totalorder %v85_v13, %v91_v14 }
  0x84   :  { %v95_v19 = vsel %vm93_vm1, 0.9007813, %v194_v15 }
  0x85   :  { %v97_v21 = vmul.f32 %v95_v19, %v63_v3 }
  0x8b   :  { %v67_v5 = vpop.xlane.xlu0 %66 }
  0x8c   :  { %v70_v6 = vsub.f32 %v62_v0, %v67_v5 }
  0x8e   :  { %v72_v7 = vmul.f32 1.442695, %v70_v6 }
  0x8f   :  { %v69_v8 = vpop.xlane.xlu0 %68 }
  0x90   :  { %163 = vpow2.f32 %v72_v7  ;;  %v71_v9 = vsub.f32 %v63_v3, %v69_v8 }
  0x92   :  { %v74_v11 = vmul.f32 1.442695, %v71_v9 }
  0x94   :  { %165 = vpow2.f32 %v74_v11 }
  0x9d   :  { %v164_v17 = vpop.eup %163 }
  0x9e   :  { %76 = vadd.xlane.f32.xlu0 %v164_v17 }
  0xa1   :  { %v166_v20 = vpop.eup %165 }
  0xa2   :  { %78 = vadd.xlane.f32.xlu1 %v166_v20  ;;  %98 = vadd.xlane.f32.xlu0 %v96_v18 }
  0xa6   :  { %100 = vadd.xlane.f32.xlu0 %v97_v21 }
 0x127   :  { %v77_v22 = vpop.xlane.xlu0 %76 }
 0x128   :  { %167 = vlog2.f32 %v77_v22 }
 0x12b   :  { %v79_v23 = vpop.xlane.xlu1 %78  ;;  %v99_v26 = vpop.xlane.xlu0 %98 }
 0x12c   :  { %169 = vlog2.f32 %v79_v23 }
 0x12f   :  { %v101_v32 = vpop.xlane.xlu0 %100 }
 0x135   :  { %v168_v24 = vpop.eup %167 }
 0x136   :  { %v81_v25 = vmul.f32 0.6931472, %v168_v24 }
 0x138   :  { %v102_v27 = vadd.f32 %v81_v25, %v67_v5 }
 0x139   :  { %v170_v28 = vpop.eup %169 }
 0x13a   :  { %v83_v29 = vmul.f32 0.6931472, %v170_v28  ;;  %v104_v30 = vsub.f32 %v102_v27, %v99_v26 }
 0x13c   :  { %v103_v31 = vadd.f32 %v83_v29, %v69_v8  ;;  %v108_v34 = vsel %vm107_vm2, %v104_v30, 0.0 }
 0x13e   :  { %v105_v33 = vsub.f32 %v103_v31, %v101_v32 }
 0x140   :  { %v109_v35 = vsel %vm107_vm2, %v105_v33, 0.0 }
 0x141   :  { %v110_v36 = vadd.f32 %v109_v35, %v108_v34 }
 0x143   :  { %111 = vadd.xlane.f32.xlu0 %v110_v36 }
 0x1cc   :  { %v112_v38 = vpop.xlane.xlu0 %111 }
 0x1cd   :  { %v113_v39 = vrot.slane %v112_v38, 4 }
 0x1cf   :  { %v114_v40 = vadd.f32 %v113_v39, %v112_v38 }
 0x1d1   :  { %v115_v41 = vrot.slane %v114_v40, 2 }
 0x1d3   :  { %v116_v42 = vadd.f32 %v115_v41, %v114_v40 }
 0x1d5   :  { %v117_v43 = vrot.slane %v116_v42, 1 }
 0x1d7   :  { %v118_v44 = vadd.f32 %v117_v43, %v116_v42 }
 0x1d9   :  { %155 = vpush %v118_v44 }
 0x20a   :  { %s156_s0 = spop %155 }
 0x20b   :  { %v120_v46 = vstv %s156_s0 }
 0x20c   :  { %v121_v47 = vadd.f32 %v120_v46, %v106_v45 }
 0x20e   :  { %123 = vst.msk [vmem:[#allocation2] sm:$0x1] %vm60_vm3, %v121_v47 }
 0x215   :  { %v127_v48 = vld [vmem:[#allocation2] sm:$0x1] }
 0x216   :  { %128 = vst.msk [vmem:[#allocation3] sm:$0x1] %vm60_vm3, %v127_v48 }
 0x217   :  { %182 = shalt.err (!%p179_p4)
}
 0x218   :  { %138 = dma.vmem_to_hbm [thread:$0]  %s136_s17, 16, %s232_s2, [#allocation4]  }
 0x219   :  { %191 = dma.done.wait [#allocation4], 16  }
 0x21a   :  { %192 = vsyncadd [#allocation4], 4294967280 }
 0x21b   :  { %142 = vsyncpa [#allocation4], 1 }

</bundles_post_ra>
